<compile_context>
chip_gen: v7x
topology: tpu7x:2x2x1
jax: 0.10.0
libtpu: 0.0.40
codegen_flags: <defaults>
</compile_context>

<pallas_src>
import jax
import jax.numpy as jnp
from jax import lax
from jax.experimental import pallas as pl
from jax.experimental.pallas import tpu as pltpu


def mha_fused_kernel(x_ref, wq_ref, wk_ref, wv_ref, wo_ref, o_ref):
    # x_ref:  (BB, T, E)  activations (compute dtype, e.g. bf16)
    # wq_ref: (H, E, D)   per-head Q weights, pre-transposed, 1/sqrt(D) folded
    # wk_ref: (H, E, D)   per-head K weights, pre-transposed
    # wv_ref: (H, E, D)   per-head V weights, pre-transposed
    # wo_ref: (H, D, E)   output projection, split per head (row blocks of Wo^T)
    # o_ref:  (BB, T, E)  bf16 output
    BB, T, E = x_ref.shape
    H, _, D = wq_ref.shape
    cdt = x_ref.dtype

    # Resident weights: loaded once per grid step (constant index_map ->
    # no re-DMA across the batch grid axis).
    wq = wq_ref[...]
    wk = wk_ref[...]
    wv = wv_ref[...]
    wo = wo_ref[...]

    # Causal mask, hoisted out of the per-sequence loop.  Finite sentinel
    # (NaN-safe if KV tiling / block skipping is added later).
    row = lax.broadcasted_iota(jnp.int32, (T, T), 0)
    col = lax.broadcasted_iota(jnp.int32, (T, T), 1)
    causal = (col <= row)[None, :, :]          # (1, T, T), broadcasts over heads
    neg_big = jnp.float32(-1e30)

    batched = (((2,), (1,)), ((0,), (0,)))     # (H, M, K) x (H, K, N) -> (H, M, N)
    scores_dn = (((2,), (2,)), ((0,), (0,)))   # contract last dims, batch over H

    # Static loop over the BB sequences folded into this grid step (BB is
    # small; the grid-step overhead amortization is what matters here).
    for b in range(BB):
        xb = jnp.broadcast_to(x_ref[b][None], (H, T, E))      # (H, T, E)

        # Per-head batched projections on the MXU, f32 accumulation.
        # 1/sqrt(D) is already folded into wq.
        q = lax.dot_general(xb, wq, batched,
                            preferred_element_type=jnp.float32)  # (H, T, D)
        k = lax.dot_general(xb, wk, batched,
                            preferred_element_type=jnp.float32)  # (H, T, D)
        v = lax.dot_general(xb, wv, batched,
                            preferred_element_type=jnp.float32)  # (H, T, D)

        # All-head scores: q @ k^T without an explicit transpose.
        s = lax.dot_general(q.astype(cdt), k.astype(cdt), scores_dn,
                            preferred_element_type=jnp.float32)  # (H, T, T)
        s = jnp.where(causal, s, neg_big)

        # Batched softmax (f32), EUP approximate reciprocal for the denom.
        s_max = jnp.max(s, axis=-1, keepdims=True)
        p = jnp.exp(s - s_max)
        denom = jnp.sum(p, axis=-1, keepdims=True)
        p = p * pl.reciprocal(denom, approx=True)
        # TODO(synk): attention dropout omitted (inference / eval semantics).

        # Batched PV matmul.
        o = lax.dot_general(p.astype(cdt), v.astype(cdt), batched,
                            preferred_element_type=jnp.float32)  # (H, T, D)

        # "Concat heads + Wo" realized as a per-head batched matmul followed
        # by a sum over the leading head axis (no lane concat, no transpose).
        c = lax.dot_general(o.astype(cdt), wo, batched,
                            preferred_element_type=jnp.float32)  # (H, T, E)
        out_b = jnp.sum(c, axis=0)                                # (T, E) f32
        # TODO(synk): output dropout omitted (inference / eval semantics).
        o_ref[b] = out_b.astype(o_ref.dtype)


def mha_forward(x, wq, wk, wv, wo, *, compute_dtype=jnp.bfloat16):
    B, T, E = x.shape
    H, D, _ = wq.shape
    assert H * D == E

    # One-time weight preprocessing (wrapper side): per-head pre-transposed
    # projection matrices with the 1/sqrt(D) score scale folded into Q, and
    # Wo^T split per head.  Piggybacks on the cast pass -> free.
    scale = jnp.float32(D) ** -0.5
    wq3 = (jnp.transpose(wq, (0, 2, 1)) * scale).astype(compute_dtype)  # (H, E, D)
    wk3 = jnp.transpose(wk, (0, 2, 1)).astype(compute_dtype)            # (H, E, D)
    wv3 = jnp.transpose(wv, (0, 2, 1)).astype(compute_dtype)            # (H, E, D)
    wo3 = wo.T.reshape(H, D, E).astype(compute_dtype)                   # (H, D, E)
    x_c = x.astype(compute_dtype)

    # Fold several sequences into one grid step (amortize the ~0.35 us
    # per-step overhead), but keep grid length >= 2 so "parallel" can shard
    # across the two TensorCores of v7x.
    bb = 1
    for cand in range(1, B + 1):
        if B % cand == 0 and cand * T <= 128 and (B // cand) >= min(2, B):
            bb = cand
    grid = (B // bb,)

    return pl.pallas_call(
        mha_fused_kernel,
        out_shape=jax.ShapeDtypeStruct((B, T, E), compute_dtype),  # bf16 writeback
        grid=grid,
        in_specs=[
            pl.BlockSpec((bb, T, E), lambda i: (i, 0, 0)),
            pl.BlockSpec((H, E, D), lambda i: (0, 0, 0)),   # resident across grid
            pl.BlockSpec((H, E, D), lambda i: (0, 0, 0)),   # resident across grid
            pl.BlockSpec((H, E, D), lambda i: (0, 0, 0)),   # resident across grid
            pl.BlockSpec((H, D, E), lambda i: (0, 0, 0)),   # resident across grid
        ],
        out_specs=pl.BlockSpec((bb, T, E), lambda i: (i, 0, 0)),
        compiler_params=pltpu.CompilerParams(
            dimension_semantics=("parallel",)),              # shards across TCs on v7x
    )(x_c, wq3, wk3, wv3, wo3)


def mha_reference(x, wq, wk, wv, wo, *, compute_dtype=jnp.bfloat16):
    # Pure-JAX reference mirroring the kernel's precision choices
    # (bf16 operands, f32 accumulation, scale folded into Q weights).
    B, T, E = x.shape
    H, D, _ = wq.shape
    cdt = compute_dtype
    xc = x.astype(cdt)
    q = jnp.einsum('bte,hde->bhtd', xc, (wq * (D ** -0.5)).astype(cdt),
                   preferred_element_type=jnp.float32)
    k = jnp.einsum('bte,hde->bhtd', xc, wk.astype(cdt),
                   preferred_element_type=jnp.float32)
    v = jnp.einsum('bte,hde->bhtd', xc, wv.astype(cdt),
                   preferred_element_type=jnp.float32)
    s = jnp.einsum('bhtd,bhsd->bhts', q.astype(cdt), k.astype(cdt),
                   preferred_element_type=jnp.float32)
    mask = jnp.tril(jnp.ones((T, T), dtype=bool))
    s = jnp.where(mask[None, None], s, -1e30)
    p = jax.nn.softmax(s, axis=-1)
    o = jnp.einsum('bhts,bhsd->bhtd', p.astype(cdt), v.astype(cdt),
                   preferred_element_type=jnp.float32)
    concat = jnp.transpose(o, (0, 2, 1, 3)).reshape(B, T, E)
    return jnp.einsum('bte,oe->bto', concat.astype(cdt), wo.astype(cdt),
                      preferred_element_type=jnp.float32)


if __name__ == "__main__":
    # Small shapes consistent with the module: seq=8, hidden=32, heads=8 -> head_size=4
    B, T, E, H = 2, 8, 32, 8
    D = E // H

    key = jax.random.PRNGKey(0)
    kx, kq, kk, kv, ko = jax.random.split(key, 5)

    # torch-Linear-like uniform(-1/sqrt(fan_in), 1/sqrt(fan_in)) init
    bound = 1.0 / (E ** 0.5)
    x = jax.random.normal(kx, (B, T, E), dtype=jnp.float32)
    wq = jax.random.uniform(kq, (H, D, E), jnp.float32, -bound, bound)
    wk = jax.random.uniform(kk, (H, D, E), jnp.float32, -bound, bound)
    wv = jax.random.uniform(kv, (H, D, E), jnp.float32, -bound, bound)
    wo = jax.random.uniform(ko, (E, E), jnp.float32, -bound, bound)

    out = jax.block_until_ready(mha_forward(x, wq, wk, wv, wo))
    ref = mha_reference(x, wq, wk, wv, wo)

    assert out.shape == (B, T, E)
    # tolerance covers bf16 operands/output and the EUP approx reciprocal
    assert jnp.allclose(out.astype(jnp.float32), ref, atol=2e-2, rtol=2e-2), \
        "mismatch vs reference"

    print("KERNEL_OK")
</pallas_src>

<mosaic_0001>
module attributes {stable_mosaic.version = 11 : i64} {
  func.func @mha_fused_kernel(%arg0: i32, %arg1: memref<1x8x32xbf16, #tpu.memory_space<vmem>>, %arg2: memref<8x32x4xbf16, #tpu.memory_space<vmem>>, %arg3: memref<8x32x4xbf16, #tpu.memory_space<vmem>>, %arg4: memref<8x32x4xbf16, #tpu.memory_space<vmem>>, %arg5: memref<8x4x32xbf16, #tpu.memory_space<vmem>>, %arg6: memref<1x8x32xbf16, #tpu.memory_space<vmem>>) attributes {dimension_semantics = [#tpu.dimension_semantics<parallel>], iteration_bounds = array<i64: 2>, scalar_prefetch = 0 : i64, scratch_operands = 0 : i64, tpu.core_type = #tpu.core_type<tc>, window_params = [{transform_indices = @transform_0, window_bounds = array<i64: 1, 8, 32>}, {pipeline_mode = #tpu.pipeline_mode<synchronous>, transform_indices = @transform_1, window_bounds = array<i64: 8, 32, 4>}, {pipeline_mode = #tpu.pipeline_mode<synchronous>, transform_indices = @transform_2, window_bounds = array<i64: 8, 32, 4>}, {pipeline_mode = #tpu.pipeline_mode<synchronous>, transform_indices = @transform_3, window_bounds = array<i64: 8, 32, 4>}, {pipeline_mode = #tpu.pipeline_mode<synchronous>, transform_indices = @transform_4, window_bounds = array<i64: 8, 4, 32>}, {transform_indices = @transform_5, window_bounds = array<i64: 1, 8, 32>}]} {
    %c0 = arith.constant 0 : index
    %c0_0 = arith.constant 0 : index
    %c0_1 = arith.constant 0 : index
    %0 = vector.load %arg2[%c0, %c0_0, %c0_1] : memref<8x32x4xbf16, #tpu.memory_space<vmem>>, vector<8x32x4xbf16>
    %c0_2 = arith.constant 0 : index
    %c0_3 = arith.constant 0 : index
    %c0_4 = arith.constant 0 : index
    %1 = vector.load %arg3[%c0_2, %c0_3, %c0_4] : memref<8x32x4xbf16, #tpu.memory_space<vmem>>, vector<8x32x4xbf16>
    %c0_5 = arith.constant 0 : index
    %c0_6 = arith.constant 0 : index
    %c0_7 = arith.constant 0 : index
    %2 = vector.load %arg4[%c0_5, %c0_6, %c0_7] : memref<8x32x4xbf16, #tpu.memory_space<vmem>>, vector<8x32x4xbf16>
    %c0_8 = arith.constant 0 : index
    %c0_9 = arith.constant 0 : index
    %c0_10 = arith.constant 0 : index
    %3 = vector.load %arg5[%c0_8, %c0_9, %c0_10] : memref<8x4x32xbf16, #tpu.memory_space<vmem>>, vector<8x4x32xbf16>
    %4 = tpu.iota {dimensions = array<i32: 0>} : vector<8x8xi32>
    %5 = tpu.iota {dimensions = array<i32: 1>} : vector<8x8xi32>
    %6 = arith.cmpi sle, %5, %4 : vector<8x8xi32>
    %7 = vector.shape_cast %6 : vector<8x8xi1> to vector<1x8x8xi1>
    %c0_11 = arith.constant 0 : index
    %c0_12 = arith.constant 0 : index
    %c0_13 = arith.constant 0 : index
    %8 = vector.load %arg1[%c0_11, %c0_12, %c0_13] : memref<1x8x32xbf16, #tpu.memory_space<vmem>>, vector<1x8x32xbf16>
    %9 = vector.shape_cast %8 : vector<1x8x32xbf16> to vector<8x32xbf16>
    %10 = vector.shape_cast %9 : vector<8x32xbf16> to vector<1x8x32xbf16>
    %11 = vector.shape_cast %10 : vector<1x8x32xbf16> to vector<1x8x32xbf16>
    %12 = vector.broadcast %11 : vector<1x8x32xbf16> to vector<8x8x32xbf16>
    %cst = arith.constant dense<0.000000e+00> : vector<8x8x4xf32>
    %13 = tpu.matmul %12, %0, %cst {dimension_numbers = #tpu.dot_dimension_numbers<[2], [1], [1], [2], [0, 0, 0, 1, 1, 2], [0], [0]>} : vector<8x8x32xbf16>, vector<8x32x4xbf16>, vector<8x8x4xf32> -> vector<8x8x4xf32>
    %cst_14 = arith.constant dense<0.000000e+00> : vector<8x8x4xf32>
    %14 = tpu.matmul %12, %1, %cst_14 {dimension_numbers = #tpu.dot_dimension_numbers<[2], [1], [1], [2], [0, 0, 0, 1, 1, 2], [0], [0]>} : vector<8x8x32xbf16>, vector<8x32x4xbf16>, vector<8x8x4xf32> -> vector<8x8x4xf32>
    %cst_15 = arith.constant dense<0.000000e+00> : vector<8x8x4xf32>
    %15 = tpu.matmul %12, %2, %cst_15 {dimension_numbers = #tpu.dot_dimension_numbers<[2], [1], [1], [2], [0, 0, 0, 1, 1, 2], [0], [0]>} : vector<8x8x32xbf16>, vector<8x32x4xbf16>, vector<8x8x4xf32> -> vector<8x8x4xf32>
    %16 = arith.truncf %13 : vector<8x8x4xf32> to vector<8x8x4xbf16>
    %17 = arith.truncf %14 : vector<8x8x4xf32> to vector<8x8x4xbf16>
    %cst_16 = arith.constant dense<0.000000e+00> : vector<8x8x8xf32>
    %18 = tpu.matmul %16, %17, %cst_16 {dimension_numbers = #tpu.dot_dimension_numbers<[2], [2], [1], [1], [0, 0, 0, 1, 1, 1], [0], [0]>} : vector<8x8x4xbf16>, vector<8x8x4xbf16>, vector<8x8x8xf32> -> vector<8x8x8xf32>
    %cst_17 = arith.constant -1.000000e+30 : f32
    %19 = vector.shape_cast %7 : vector<1x8x8xi1> to vector<1x8x8xi1>
    %20 = vector.broadcast %19 : vector<1x8x8xi1> to vector<8x8x8xi1>
    %21 = vector.broadcast %cst_17 : f32 to vector<8x8x8xf32>
    %22 = arith.select %20, %18, %21 : vector<8x8x8xi1>, vector<8x8x8xf32>
    %cst_18 = arith.constant dense<0xFF800000> : vector<8x8xf32>
    %23 = vector.multi_reduction <maximumf>, %22, %cst_18 [2] : vector<8x8x8xf32> to vector<8x8xf32>
    %24 = vector.shape_cast %23 : vector<8x8xf32> to vector<8x8x1xf32>
    %25 = vector.broadcast %24 : vector<8x8x1xf32> to vector<8x8x8xf32>
    %26 = arith.subf %22, %25 : vector<8x8x8xf32>
    %27 = math.exp %26 : vector<8x8x8xf32>
    %cst_19 = arith.constant dense<0.000000e+00> : vector<8x8xf32>
    %28 = vector.multi_reduction <add>, %27, %cst_19 [2] : vector<8x8x8xf32> to vector<8x8xf32>
    %29 = vector.shape_cast %28 : vector<8x8xf32> to vector<8x8x1xf32>
    %30 = tpu.reciprocal %29 {approx = true} : vector<8x8x1xf32> -> vector<8x8x1xf32>
    %31 = vector.broadcast %30 : vector<8x8x1xf32> to vector<8x8x8xf32>
    %32 = arith.mulf %27, %31 : vector<8x8x8xf32>
    %33 = arith.truncf %32 : vector<8x8x8xf32> to vector<8x8x8xbf16>
    %34 = arith.truncf %15 : vector<8x8x4xf32> to vector<8x8x4xbf16>
    %cst_20 = arith.constant dense<0.000000e+00> : vector<8x8x4xf32>
    %35 = tpu.matmul %33, %34, %cst_20 {dimension_numbers = #tpu.dot_dimension_numbers<[2], [1], [1], [2], [0, 0, 0, 1, 1, 2], [0], [0]>} : vector<8x8x8xbf16>, vector<8x8x4xbf16>, vector<8x8x4xf32> -> vector<8x8x4xf32>
    %36 = arith.truncf %35 : vector<8x8x4xf32> to vector<8x8x4xbf16>
    %cst_21 = arith.constant dense<0.000000e+00> : vector<8x8x32xf32>
    %37 = tpu.matmul %36, %3, %cst_21 {dimension_numbers = #tpu.dot_dimension_numbers<[2], [1], [1], [2], [0, 0, 0, 1, 1, 2], [0], [0]>} : vector<8x8x4xbf16>, vector<8x4x32xbf16>, vector<8x8x32xf32> -> vector<8x8x32xf32>
    %cst_22 = arith.constant dense<0.000000e+00> : vector<8x32xf32>
    %38 = vector.multi_reduction <add>, %37, %cst_22 [0] : vector<8x8x32xf32> to vector<8x32xf32>
    %39 = arith.truncf %38 : vector<8x32xf32> to vector<8x32xbf16>
    %c0_23 = arith.constant 0 : index
    %c0_24 = arith.constant 0 : index
    %c0_25 = arith.constant 0 : index
    %40 = vector.load %arg6[%c0_23, %c0_24, %c0_25] : memref<1x8x32xbf16, #tpu.memory_space<vmem>>, vector<1x8x32xbf16>
    %41 = vector.shape_cast %40 : vector<1x8x32xbf16> to vector<8x32xbf16>
    %42 = vector.shape_cast %39 : vector<8x32xbf16> to vector<1x8x32xbf16>
    tpu.vector_store %arg6[%c0_23, %c0_24, %c0_25], %42 {strides = array<i32>} : memref<1x8x32xbf16, #tpu.memory_space<vmem>>, vector<1x8x32xbf16>,
    return
  }
  func.func @transform_0(%arg0: i32) -> (i32, i32, i32) {
    %c0_i32 = arith.constant 0 : i32
    %c0_i32_0 = arith.constant 0 : i32
    %c0_i32_1 = arith.constant 0 : i32
    return %arg0, %c0_i32, %c0_i32_0 : i32, i32, i32
  }
  func.func @transform_1(%arg0: i32) -> (i32, i32, i32) {
    %c0_i32 = arith.constant 0 : i32
    %c0_i32_0 = arith.constant 0 : i32
    %c0_i32_1 = arith.constant 0 : i32
    %c0_i32_2 = arith.constant 0 : i32
    return %c0_i32, %c0_i32_0, %c0_i32_1 : i32, i32, i32
  }
  func.func @transform_2(%arg0: i32) -> (i32, i32, i32) {
    %c0_i32 = arith.constant 0 : i32
    %c0_i32_0 = arith.constant 0 : i32
    %c0_i32_1 = arith.constant 0 : i32
    %c0_i32_2 = arith.constant 0 : i32
    return %c0_i32, %c0_i32_0, %c0_i32_1 : i32, i32, i32
  }
  func.func @transform_3(%arg0: i32) -> (i32, i32, i32) {
    %c0_i32 = arith.constant 0 : i32
    %c0_i32_0 = arith.constant 0 : i32
    %c0_i32_1 = arith.constant 0 : i32
    %c0_i32_2 = arith.constant 0 : i32
    return %c0_i32, %c0_i32_0, %c0_i32_1 : i32, i32, i32
  }
  func.func @transform_4(%arg0: i32) -> (i32, i32, i32) {
    %c0_i32 = arith.constant 0 : i32
    %c0_i32_0 = arith.constant 0 : i32
    %c0_i32_1 = arith.constant 0 : i32
    %c0_i32_2 = arith.constant 0 : i32
    return %c0_i32, %c0_i32_0, %c0_i32_1 : i32, i32, i32
  }
  func.func @transform_5(%arg0: i32) -> (i32, i32, i32) {
    %c0_i32 = arith.constant 0 : i32
    %c0_i32_0 = arith.constant 0 : i32
    %c0_i32_1 = arith.constant 0 : i32
    return %arg0, %c0_i32, %c0_i32_0 : i32, i32, i32
  }
}

</mosaic_0001>

<bundles_post_ra>
// kernel: tpu_custom_call.1
= control target key start
LH: loop header
LB: loop body
LE: loop exit
PB: predicated region body
PF: predicated region fallthrough
CT: control target
= control target key end

     0   :  { %10 = vsyncpa [#allocation3], 0  ;;  %s4328_s0 = inlined_call_operand.vmem [shape: bf16[2,8,32], index: 0, kind: input, shape index: {}]   ;;  %s4329_s1 = inlined_call_operand.vmem [shape: bf16[8,32,4], index: 1, kind: input, shape index: {}]   ;;  %s4330_s2 = inlined_call_operand.vmem [shape: bf16[8,32,4], index: 2, kind: input, shape index: {}]   ;;  %s4331_s3 = inlined_call_operand.vmem [shape: bf16[8,32,4], index: 3, kind: input, shape index: {}]   ;;  %s4332_s4 = inlined_call_operand.vmem [shape: bf16[8,4,32], index: 4, kind: input, shape index: {}]   ;;  %s4333_s5 = inlined_call_operand.hbm [shape: bf16[2,8,32], index: 5, kind: output, shape index: {}]  }
   0x1   :  { %12 = vsyncpa [#allocation3 + $0x1], 0  ;;  %s3700_s18 = smov 0   ;;  %s3702_s19 = smov 0  }
   0x2   :  { %s3704_s20 = smov 0   ;;  %s3706_s21 = smov 0  }
   0x3 LB: > { %s3721_s22 = sadd.s32 4294967295, %s3665_s21   ;;  %s2920_s23 = sadd.s32 4294967294, %s3665_s21   ;;  %s3665_s21 = sphi %s3706_s21, %s4341_s21   ;;  %s3661_s20 = sphi %s3704_s20, %s4340_s20   ;;  %s3657_s19 = sphi %s3702_s19, %s4339_s19   ;;  %s3653_s18 = sphi %s3700_s18, %s4338_s18  }
   0x4   : > { %s3725_s24 = sadd.s32 1, %s3665_s21   ;;  %s135_s25 = sadd.s32 1, %s3661_s20 }
   0x5   : > { %s132_s26 = ssub.s32 %s3665_s21, %s3725_s24  ;;  %p145_p0 = scmp.ne.s32.totalorder %s3661_s20, %s3657_s19 }
   0x6   : > { %p133_p1 = scmp.eq.s32.totalorder %s132_s26, 0  ;;  %p146_p2 = scmp.eq.s32.totalorder %s3721_s22, 1 }
   0x7   : > { %p151_p3 = scmp.ne.s32.totalorder %s3657_s19, %s3653_s18  ;;  %p152_p4 = scmp.eq.s32.totalorder %s2920_s23, 1 }
   0x8   : > { %s3736_s27 = scalar_select %p133_p1, %s3661_s20, %s135_s25  }
   0x9   : > { %p3738_p5 = por %p146_p2, %p145_p0  ;;  %p3742_p6 = por %p152_p4, %p151_p3 }
   0xa   : > { %p2923_p7 = scmp.ge.s32.totalorder %s3665_s21, 1  ;;  %p189_p8 = scmp.lt.s32.totalorder %s3665_s21, 3 }
   0xc   : > { %p190_p9 = pnand %p2923_p7, %p189_p8 }
   0xd   : > { %v3523_v0 = vld [vmem:[%s4329_s1] sm:$0xff] (!%p190_p9)   ;;  %v3667_v1 = vmov (!%p190_p9), 0.0   ;;  %v3524_v2 = vld [vmem:[%s4329_s1 + $0x10] sm:$0xff] (!%p190_p9)   ;;  %v3525_v3 = vld [vmem:[%s4329_s1 + $0x8] sm:$0xff] (!%p190_p9)   ;;  %vm3668_vm0 = vmmov (!%p190_p9), 0   ;;  %p216_p10 = scmp.lt.s32.totalorder (!%p190_p9), %s3721_s22, 1 }
   0xe   : > { %193 = sbr.rel (%p190_p9) target bundleno = 1282 (0x502), region = 40  ;;  %3146 = vmatprep.subr.bf16.mxu0 (!%p190_p9), %v3667_v1  ;;  %3154 = vmatprep.subr.bf16.mxu1 (!%p190_p9), %v3667_v1  ;;  %v3526_v4 = vld [vmem:[%s4329_s1 + $0x18] sm:$0xff] (!%p190_p9)   ;;  %vm343_vm1 = vcmask (!%p190_p9), 261120   ;;  %v3527_v5 = vld [vmem:[%s4329_s1 + $0x20] sm:$0xff] (!%p190_p9)   ;;  %v3528_v6 = vld [vmem:[%s4329_s1 + $0x30] sm:$0xff] (!%p190_p9)   ;;  %vm1599_vm2 = vcmask (!%p190_p9), 31744  }
   0xf   : > { %3147 = vmatpush3.bf16.msra.mxu0 (!%p190_p9), %v3523_v0  ;;  %3150 = vmatprep.mubr.msk.bf16.mxu0 (!%p190_p9), %vm3668_vm0, %v3667_v1  ;;  %v3529_v8 = vld [vmem:[%s4329_s1 + $0x28] sm:$0xff] (!%p190_p9)   ;;  %v3530_v9 = vld [vmem:[%s4329_s1 + $0x38] sm:$0xff] (!%p190_p9)   ;;  %v3531_v10 = vld [vmem:[%s4329_s1 + $0x40] sm:$0xff] (!%p190_p9)   ;;  %vm2086_vm3 = vcmask (!%p190_p9), 1043456   ;;  %vm1978_vm5 = vcmask (!%p190_p9), 64512   ;;  %vm2463_vm6 = vcmask (!%p190_p9), 1041408  }
  0x10   : > { %3155 = vmatpush3.bf16.msra.mxu1 (!%p190_p9), %v3524_v2  ;;  %3148 = vmatprep.subr.bf16.mxu0 (!%p190_p9), %v3667_v1  ;;  %v3532_v11 = vld [vmem:[%s4329_s1 + $0x50] sm:$0xff] (!%p190_p9)   ;;  %v3533_v12 = vld [vmem:[%s4329_s1 + $0x48] sm:$0xff] (!%p190_p9)   ;;  %v3534_v13 = vld [vmem:[%s4329_s1 + $0x58] sm:$0xff] (!%p190_p9)   ;;  %s213_s10 = sand.u32 (!%p190_p9), 1, %s3657_s19   ;;  %s3023_s12 = sshll.u32 (!%p190_p9), %s3721_s22, 6  ;;  %vm2845_vm7 = vcmask (!%p190_p9), 257024  }
  0x11   : > { %3156 = vmatprep.subr.bf16.mxu1 (!%p190_p9), %v3667_v1  ;;  %3158 = vmatprep.mubr.msk.bf16.mxu1 (!%p190_p9), %vm3668_vm0, %v3667_v1  ;;  %v3535_v14 = vld [vmem:[%s4329_s1 + $0x60] sm:$0xff] (!%p190_p9)   ;;  %v3536_v15 = vld [vmem:[%s4329_s1 + $0x70] sm:$0xff] (!%p190_p9)   ;;  %v3537_v16 = vld [vmem:[%s4329_s1 + $0x68] sm:$0xff] (!%p190_p9)   ;;  %s2924_s11 = sshll.u32 (!%p190_p9), %s213_s10, 2  ;;  %s4286_s17 = scalar_lea.hbm (!%p190_p9), %s4333_s5, %s3023_s12 }
  0x12   : > { %v3538_v17 = vld [vmem:[%s4329_s1 + $0x78] sm:$0xff] (!%p190_p9)   ;;  %v3539_v18 = vld [vmem:[%s4330_s2] sm:$0xff] (!%p190_p9)   ;;  %v3540_v19 = vld [vmem:[%s4330_s2 + $0x10] sm:$0xff] (!%p190_p9)   ;;  %s2848_s23 = scalar_lea.sflag (!%p190_p9), [#allocation3], %s213_s10 }
  0x13   : > { %3149 = vmatpush3.bf16.msra.mxu0 (!%p190_p9), %v3525_v3  ;;  %v3541_v20 = vld [vmem:[%s4330_s2 + $0x8] sm:$0xff] (!%p190_p9)   ;;  %v3542_v21 = vld [vmem:[%s4330_s2 + $0x18] sm:$0xff] (!%p190_p9)   ;;  %v3543_v22 = vld [vmem:[%s4330_s2 + $0x20] sm:$0xff] (!%p190_p9)  }
  0x14   : > { %3157 = vmatpush3.bf16.msra.mxu1 (!%p190_p9), %v3526_v4  ;;  %3162 = vmatprep.subr.bf16.mxu0 (!%p190_p9), %v3667_v1  ;;  %v3544_v23 = vld [vmem:[%s4330_s2 + $0x30] sm:$0xff] (!%p190_p9)   ;;  %v3545_v24 = vld [vmem:[%s4330_s2 + $0x28] sm:$0xff] (!%p190_p9)   ;;  %v3546_v25 = vld [vmem:[%s4330_s2 + $0x38] sm:$0xff] (!%p190_p9)  }
  0x15   : > { %s217_s13 = scalar_select %p216_p10, %s3721_s22, 1  ;;  %3170 = vmatprep.subr.bf16.mxu1 %v3667_v1  ;;  %v3547_v26 = vld [vmem:[%s4330_s2 + $0x40] sm:$0xff]   ;;  %v3548_v27 = vld [vmem:[%s4330_s2 + $0x50] sm:$0xff]   ;;  %v3549_v28 = vld [vmem:[%s4330_s2 + $0x48] sm:$0xff]  }
  0x16   : > { %v3550_v29 = vld [vmem:[%s4330_s2 + $0x58] sm:$0xff]   ;;  %v3551_v30 = vld [vmem:[%s4330_s2 + $0x60] sm:$0xff]   ;;  %v3552_v31 = vld [vmem:[%s4330_s2 + $0x70] sm:$0xff]  }
  0x17   : > { %s2925_s14 = sshll.u32 %s217_s13, 2  ;;  %v3553_v32 = vld [vmem:[%s4330_s2 + $0x68] sm:$0xff]   ;;  %v3554_v33 = vld [vmem:[%s4330_s2 + $0x78] sm:$0xff]   ;;  %v3555_v34 = vld [vmem:[%s4331_s3] sm:$0xff]   ;;  %s215_s13 = scalar_lea.vmem [#allocation2], %s2924_s11 }
  0x18   : > { %s219_s25 = scalar_lea.vmem %s4328_s0, %s2925_s14  ;;  %v3556_v35 = vld [vmem:[%s4331_s3 + $0x10] sm:$0xff]   ;;  %v3557_v36 = vld [vmem:[%s4331_s3 + $0x8] sm:$0xff]   ;;  %v3558_v37 = vld [vmem:[%s4331_s3 + $0x18] sm:$0xff]   ;;  %s2861_s14 = sshll.u32 %s215_s13, 4  ;;  %s4288_s14 = int_to_ptr.vmem [resolvable:$true] %s2861_s14 }
  0x19   : > { %v3780_v7 = vld [vmem:[%s219_s25] sm:$0xf]  ;;  %v3560_v39 = vld [vmem:[%s4331_s3 + $0x30] sm:$0xff]   ;;  %v3561_v40 = vld [vmem:[%s4331_s3 + $0x28] sm:$0xff]   ;;  %s3603_s22 = scalar_lea.vmem %s4288_s14, 64  ;;  %s3669_s25 = smov [#allocation2]  }
  0x1a   : > { %3151 = vmatmul.mubr.msk.bf16.vlgmr.msra.gmra.mrb[0].mxu0 %vm343_vm1, %v3780_v7  ;;  %3159 = vmatmul.mubr.msk.bf16.vlgmr.msra.gmra.mrb[0].mxu1 %vm343_vm1, %v3780_v7  ;;  %v3559_v38 = vld [vmem:[%s4331_s3 + $0x20] sm:$0xff]   ;;  %v3562_v41 = vld [vmem:[%s4331_s3 + $0x38] sm:$0xff]   ;;  %v3564_v43 = vld [vmem:[%s4331_s3 + $0x50] sm:$0xff]   ;;  %p3604_p11 = scmp.ne.s32.totalorder %s4288_s14, %s3603_s22  ;;  %s3607_s26 = sshll.u32 %s3669_s25, 4  ;;  %s3608_s26 = int_to_ptr.vmem [resolvable:$false] %s3607_s26 }
  0x1b   : > { %3163 = vmatpush3.bf16.msra.mxu0 %v3527_v5  ;;  %3171 = vmatpush3.bf16.msra.mxu1 %v3528_v6  ;;  %v3563_v42 = vld [vmem:[%s4331_s3 + $0x40] sm:$0xff]   ;;  %v3565_v44 = vld [vmem:[%s4331_s3 + $0x48] sm:$0xff]   ;;  %v3566_v45 = vld [vmem:[%s4331_s3 + $0x58] sm:$0xff]   ;;  %s3609_s30 = scalar_lea.vmem %s3608_s26, 128  ;;  %p3610_p0 = scmp.lt.s32.totalorder %s4288_s14, %s3608_s26 }
  0x1c   : > { %3164 = vmatprep.subr.bf16.mxu0 %v3667_v1  ;;  %3172 = vmatprep.subr.bf16.mxu1 %v3667_v1  ;;  %v3567_v46 = vld [vmem:[%s4331_s3 + $0x60] sm:$0xff]   ;;  %v3568_v47 = vld [vmem:[%s4331_s3 + $0x70] sm:$0xff]   ;;  %v3569_v48 = vld [vmem:[%s4331_s3 + $0x68] sm:$0xff]   ;;  %p3605_p12 = pnand %p3604_p11, %p3738_p5  ;;  %p3611_p1 = scmp.lt.s32.totalorder %s3609_s30, %s3603_s22 }
  0x1d   : > { %3166 = vmatprep.mubr.msk.bf16.mxu0 %vm3668_vm0, %v3667_v1  ;;  %3174 = vmatprep.mubr.msk.bf16.mxu1 %vm3668_vm0, %v3667_v1  ;;  %v3570_v49 = vld [vmem:[%s4331_s3 + $0x78] sm:$0xff]  }
  0x1e   : > { %p3606_p13 = pneg %p3605_p12  ;;  %p3612_p2 = por %p3611_p1, %p3610_p0 }
  0x1f   : > { %3165 = vmatpush3.bf16.msra.mxu0 %v3529_v8  ;;  %3173 = vmatpush3.bf16.msra.mxu1 %v3530_v9 }
  0x20   : > { %3178 = vmatprep.subr.bf16.mxu0 %v3667_v1  ;;  %3186 = vmatprep.subr.bf16.mxu1 %v3667_v1  ;;  %p3613_p3 = pnand %p3612_p2, %p3606_p13 }
  0x22   : > { %3167 = vmatmul.mubr.msk.bf16.vlgmr.msra.gmra.mrb[4].mxu0 %vm343_vm1, %v3780_v7  ;;  %3175 = vmatmul.mubr.msk.bf16.vlgmr.msra.gmra.mrb[4].mxu1 %vm343_vm1, %v3780_v7 }
  0x23   : > { %3179 = vmatpush3.bf16.msra.mxu0 %v3531_v10  ;;  %3187 = vmatpush3.bf16.msra.mxu1 %v3532_v11 }
  0x24   : > { %3180 = vmatprep.subr.bf16.mxu0 %v3667_v1  ;;  %3188 = vmatprep.subr.bf16.mxu1 %v3667_v1 }
  0x25   : > { %3182 = vmatprep.mubr.msk.bf16.mxu0 %vm3668_vm0, %v3667_v1  ;;  %3190 = vmatprep.mubr.msk.bf16.mxu1 %vm3668_vm0, %v3667_v1 }
  0x27   : > { %3181 = vmatpush3.bf16.msra.mxu0 %v3533_v12  ;;  %3189 = vmatpush3.bf16.msra.mxu1 %v3534_v13 }
  0x28   : > { %3194 = vmatprep.subr.bf16.mxu0 %v3667_v1  ;;  %3202 = vmatprep.subr.bf16.mxu1 %v3667_v1 }
  0x2a   : > { %3183 = vmatmul.mubr.msk.bf16.vlgmr.msra.gmra.mrb[8].mxu0 %vm343_vm1, %v3780_v7  ;;  %3191 = vmatmul.mubr.msk.bf16.vlgmr.msra.gmra.mrb[8].mxu1 %vm343_vm1, %v3780_v7 }
  0x2b   : > { %3195 = vmatpush3.bf16.msra.mxu0 %v3535_v14  ;;  %3203 = vmatpush3.bf16.msra.mxu1 %v3536_v15 }
  0x2c   : > { %3196 = vmatprep.subr.bf16.mxu0 %v3667_v1  ;;  %3204 = vmatprep.subr.bf16.mxu1 %v3667_v1 }
  0x2d   : > { %3198 = vmatprep.mubr.msk.bf16.mxu0 %vm3668_vm0, %v3667_v1  ;;  %3206 = vmatprep.mubr.msk.bf16.mxu1 %vm3668_vm0, %v3667_v1 }
  0x2f   : > { %3197 = vmatpush3.bf16.msra.mxu0 %v3537_v16  ;;  %3205 = vmatpush3.bf16.msra.mxu1 %v3538_v17 }
  0x30   : > { %3210 = vmatprep.subr.bf16.mxu0 %v3667_v1  ;;  %3218 = vmatprep.subr.bf16.mxu1 %v3667_v1 }
  0x32   : > { %3199 = vmatmul.mubr.msk.bf16.vlgmr.msra.gmra.mrb[12].mxu0 %vm343_vm1, %v3780_v7  ;;  %3207 = vmatmul.mubr.msk.bf16.vlgmr.msra.gmra.mrb[12].mxu1 %vm343_vm1, %v3780_v7 }
  0x33   : > { %3211 = vmatpush3.bf16.msra.mxu0 %v3539_v18  ;;  %3219 = vmatpush3.bf16.msra.mxu1 %v3540_v19 }
  0x34   : > { %3212 = vmatprep.subr.bf16.mxu0 %v3667_v1  ;;  %3220 = vmatprep.subr.bf16.mxu1 %v3667_v1 }
  0x35   : > { %3214 = vmatprep.mubr.msk.bf16.mxu0 %vm3668_vm0, %v3667_v1  ;;  %3222 = vmatprep.mubr.msk.bf16.mxu1 %vm3668_vm0, %v3667_v1 }
  0x37   : > { %3213 = vmatpush3.bf16.msra.mxu0 %v3541_v20  ;;  %3221 = vmatpush3.bf16.msra.mxu1 %v3542_v21 }
  0x38   : > { %3226 = vmatprep.subr.bf16.mxu0 %v3667_v1  ;;  %3234 = vmatprep.subr.bf16.mxu1 %v3667_v1 }
  0x3a   : > { %3215 = vmatmul.mubr.msk.bf16.vlgmr.msra.gmra.mrb[16].mxu0 %vm343_vm1, %v3780_v7  ;;  %3223 = vmatmul.mubr.msk.bf16.vlgmr.msra.gmra.mrb[16].mxu1 %vm343_vm1, %v3780_v7 }
  0x3b   : > { %3227 = vmatpush3.bf16.msra.mxu0 %v3543_v22  ;;  %3235 = vmatpush3.bf16.msra.mxu1 %v3544_v23 }
  0x3c   : > { %3228 = vmatprep.subr.bf16.mxu0 %v3667_v1  ;;  %3236 = vmatprep.subr.bf16.mxu1 %v3667_v1 }
  0x3d   : > { %3230 = vmatprep.mubr.msk.bf16.mxu0 %vm3668_vm0, %v3667_v1  ;;  %3238 = vmatprep.mubr.msk.bf16.mxu1 %vm3668_vm0, %v3667_v1 }
  0x3f   : > { %3229 = vmatpush3.bf16.msra.mxu0 %v3545_v24  ;;  %3237 = vmatpush3.bf16.msra.mxu1 %v3546_v25 }
  0x40   : > { %3242 = vmatprep.subr.bf16.mxu0 %v3667_v1  ;;  %3250 = vmatprep.subr.bf16.mxu1 %v3667_v1 }
  0x42   : > { %3231 = vmatmul.mubr.msk.bf16.vlgmr.msra.gmra.mrb[20].mxu0 %vm343_vm1, %v3780_v7  ;;  %3239 = vmatmul.mubr.msk.bf16.vlgmr.msra.gmra.mrb[20].mxu1 %vm343_vm1, %v3780_v7 }
  0x43   : > { %3243 = vmatpush3.bf16.msra.mxu0 %v3547_v26  ;;  %3251 = vmatpush3.bf16.msra.mxu1 %v3548_v27 }
  0x44   : > { %3244 = vmatprep.subr.bf16.mxu0 %v3667_v1  ;;  %3252 = vmatprep.subr.bf16.mxu1 %v3667_v1 }
  0x45   : > { %3246 = vmatprep.mubr.msk.bf16.mxu0 %vm3668_vm0, %v3667_v1  ;;  %3254 = vmatprep.mubr.msk.bf16.mxu1 %vm3668_vm0, %v3667_v1 }
  0x47   : > { %3245 = vmatpush3.bf16.msra.mxu0 %v3549_v28  ;;  %3253 = vmatpush3.bf16.msra.mxu1 %v3550_v29 }
  0x48   : > { %3258 = vmatprep.subr.bf16.mxu0 %v3667_v1  ;;  %3266 = vmatprep.subr.bf16.mxu1 %v3667_v1 }
  0x4a   : > { %3247 = vmatmul.mubr.msk.bf16.vlgmr.msra.gmra.mrb[24].mxu0 %vm343_vm1, %v3780_v7  ;;  %3255 = vmatmul.mubr.msk.bf16.vlgmr.msra.gmra.mrb[24].mxu1 %vm343_vm1, %v3780_v7 }
  0x4b   : > { %3259 = vmatpush3.bf16.msra.mxu0 %v3551_v30  ;;  %3267 = vmatpush3.bf16.msra.mxu1 %v3552_v31 }
  0x4c   : > { %3260 = vmatprep.subr.bf16.mxu0 %v3667_v1  ;;  %3268 = vmatprep.subr.bf16.mxu1 %v3667_v1 }
  0x4d   : > { %3262 = vmatprep.mubr.msk.bf16.mxu0 %vm3668_vm0, %v3667_v1  ;;  %3270 = vmatprep.mubr.msk.bf16.mxu1 %vm3668_vm0, %v3667_v1 }
  0x4f   : > { %3261 = vmatpush3.bf16.msra.mxu0 %v3553_v32  ;;  %3269 = vmatpush3.bf16.msra.mxu1 %v3554_v33 }
  0x50   : > { %3274 = vmatprep.subr.bf16.mxu0 %v3667_v1  ;;  %3282 = vmatprep.subr.bf16.mxu1 %v3667_v1 }
  0x52   : > { %3263 = vmatmul.mubr.msk.bf16.vlgmr.msra.gmra.mrb[28].mxu0 %vm343_vm1, %v3780_v7  ;;  %3271 = vmatmul.mubr.msk.bf16.vlgmr.msra.gmra.mrb[28].mxu1 %vm343_vm1, %v3780_v7 }
  0x53   : > { %3275 = vmatpush3.bf16.msra.mxu0 %v3555_v34  ;;  %3283 = vmatpush3.bf16.msra.mxu1 %v3556_v35 }
  0x54   : > { %3276 = vmatprep.subr.bf16.mxu0 %v3667_v1  ;;  %3284 = vmatprep.subr.bf16.mxu1 %v3667_v1 }
  0x55   : > { %3278 = vmatprep.mubr.msk.bf16.mxu0 %vm3668_vm0, %v3667_v1  ;;  %3286 = vmatprep.mubr.msk.bf16.mxu1 %vm3668_vm0, %v3667_v1 }
  0x57   : > { %3277 = vmatpush3.bf16.msra.mxu0 %v3557_v36  ;;  %3285 = vmatpush3.bf16.msra.mxu1 %v3558_v37 }
  0x58   : > { %3290 = vmatprep.subr.bf16.mxu0 %v3667_v1  ;;  %3298 = vmatprep.subr.bf16.mxu1 %v3667_v1 }
  0x5a   : > { %3279 = vmatmul.mubr.msk.bf16.vlgmr.msra.gmra.mrb[32].mxu0 %vm343_vm1, %v3780_v7  ;;  %3287 = vmatmul.mubr.msk.bf16.vlgmr.msra.gmra.mrb[32].mxu1 %vm343_vm1, %v3780_v7 }
  0x5b   : > { %3291 = vmatpush3.bf16.msra.mxu0 %v3559_v38  ;;  %3294 = vmatprep.mubr.msk.bf16.mxu0 %vm3668_vm0, %v3667_v1 }
  0x5c   : > { %3292 = vmatprep.subr.bf16.mxu0 %v3667_v1  ;;  %3299 = vmatpush3.bf16.msra.mxu1 %v3560_v39 }
  0x5d   : > { %3302 = vmatprep.mubr.msk.bf16.mxu1 %vm3668_vm0, %v3667_v1  ;;  %3300 = vmatprep.subr.bf16.mxu1 %v3667_v1 }
  0x5f   : > { %3293 = vmatpush3.bf16.msra.mxu0 %v3561_v40 }
  0x60   : > { %3306 = vmatprep.subr.bf16.mxu0 %v3667_v1  ;;  %3301 = vmatpush3.bf16.msra.mxu1 %v3562_v41 }
  0x61   : > { %3314 = vmatprep.subr.bf16.mxu1 %v3667_v1 }
  0x62   : > { %3295 = vmatmul.mubr.msk.bf16.vlgmr.msra.gmra.mrb[36].mxu0 %vm343_vm1, %v3780_v7 }
  0x63   : > { %3307 = vmatpush3.bf16.msra.mxu0 %v3563_v42  ;;  %3310 = vmatprep.mubr.msk.bf16.mxu0 %vm3668_vm0, %v3667_v1 }
  0x64   : > { %3303 = vmatmul.mubr.msk.bf16.vlgmr.msra.gmra.mrb[36].mxu1 %vm343_vm1, %v3780_v7  ;;  %3308 = vmatprep.subr.bf16.mxu0 %v3667_v1 }
  0x65   : > { %3315 = vmatpush3.bf16.msra.mxu1 %v3564_v43  ;;  %3318 = vmatprep.mubr.msk.bf16.mxu1 %vm3668_vm0, %v3667_v1 }
  0x66   : > { %3316 = vmatprep.subr.bf16.mxu1 %v3667_v1 }
  0x67   : > { %3309 = vmatpush3.bf16.msra.mxu0 %v3565_v44 }
  0x68   : > { %3322 = vmatprep.subr.bf16.mxu0 %v3667_v1 }
  0x69   : > { %3317 = vmatpush3.bf16.msra.mxu1 %v3566_v45 }
  0x6a   : > { %3311 = vmatmul.mubr.msk.bf16.vlgmr.msra.gmra.mrb[40].mxu0 %vm343_vm1, %v3780_v7  ;;  %3330 = vmatprep.subr.bf16.mxu1 %v3667_v1 }
  0x6b   : > { %3323 = vmatpush3.bf16.msra.mxu0 %v3567_v46  ;;  %3326 = vmatprep.mubr.msk.bf16.mxu0 %vm3668_vm0, %v3667_v1 }
  0x6c   : > { %3319 = vmatmul.mubr.msk.bf16.vlgmr.msra.gmra.mrb[40].mxu1 %vm343_vm1, %v3780_v7  ;;  %3324 = vmatprep.subr.bf16.mxu0 %v3667_v1 }
  0x6d   : > { %3331 = vmatpush3.bf16.msra.mxu1 %v3568_v47  ;;  %3334 = vmatprep.mubr.msk.bf16.mxu1 %vm3668_vm0, %v3667_v1 }
  0x6e   : > { %3332 = vmatprep.subr.bf16.mxu1 %v3667_v1 }
  0x6f   : > { %3325 = vmatpush3.bf16.msra.mxu0 %v3569_v48 }
  0x70   : > { %3338 = vmatprep.subr.bf16.mxu0 %v3667_v1 }
  0x71   : > { %3333 = vmatpush3.bf16.msra.mxu1 %v3570_v49 }
  0x72   : > { %3344 = vmatprep.subr.bf16.mxu1 %v3667_v1  ;;  %3327 = vmatmul.mubr.msk.bf16.vlgmr.msra.gmra.mrb[44].mxu0 %vm343_vm1, %v3780_v7 }
  0x73   : > { %3340 = vmatprep.mubr.msk.bf16.mxu0 %vm3668_vm0, %v3667_v1 }
  0x74   : > { %3335 = vmatmul.mubr.msk.bf16.vlgmr.msra.gmra.mrb[44].mxu1 %vm343_vm1, %v3780_v7 }
  0x75   : > { %3346 = vmatprep.mubr.msk.bf16.mxu1 %vm3668_vm0, %v3667_v1 }
  0xed   : > { %v381_v50 = vpop.f32.mrb[0].mxu0  ;;  %v433_v52 = vpop.f32.mrb[0].mxu1 }
  0xee   : > { %v3152_v51 = vpop.f32.mrb[1].mxu0  ;;  %v3160_v54 = vpop.f32.mrb[1].mxu1  ;;  %v1583_v32 = vpack.c.bf16 %v381_v50, %v381_v50  ;;  %v1584_v36 = vpack.c.bf16 %v433_v52, %v433_v52 }
  0xef   : > { %v384_v53 = vpop.f32.mrb[2].mxu0  ;;  %v436_v56 = vpop.f32.mrb[2].mxu1 }
  0xf0   : > { %v3153_v55 = vpop.f32.mrb[3].mxu0  ;;  %v3161_v57 = vpop.f32.mrb[3].mxu1 }
  0xf5   : > { %v4049_v58 = vpop.f32.mrb[4].mxu0  ;;  %v4051_v60 = vpop.f32.mrb[4].mxu1 }
  0xf6   : > { %v3168_v59 = vpop.f32.mrb[5].mxu0  ;;  %v3176_v62 = vpop.f32.mrb[5].mxu1  ;;  %v1585_v46 = vpack.c.bf16 %v4049_v58, %v4049_v58  ;;  %v1586_v50 = vpack.c.bf16 %v4051_v60, %v4051_v60 }
  0xf7   : > { %v488_v61 = vpop.f32.mrb[6].mxu0  ;;  %v540_v0 = vpop.f32.mrb[6].mxu1 }
  0xf8   : > { %v3169_v63 = vpop.f32.mrb[7].mxu0  ;;  %v3177_v2 = vpop.f32.mrb[7].mxu1 }
  0xfd   : > { %v4053_v3 = vpop.f32.mrb[8].mxu0  ;;  %v4055_v5 = vpop.f32.mrb[8].mxu1 }
  0xfe   : > { %v3184_v4 = vpop.f32.mrb[9].mxu0  ;;  %v3192_v7 = vpop.f32.mrb[9].mxu1  ;;  %v1587_v60 = vpack.c.bf16 %v4053_v3, %v4053_v3  ;;  %v1588_v0 = vpack.c.bf16 %v4055_v5, %v4055_v5 }
  0xff   : > { %v592_v6 = vpop.f32.mrb[10].mxu0  ;;  %v644_v9 = vpop.f32.mrb[10].mxu1 }
 0x100   : > { %v3185_v8 = vpop.f32.mrb[11].mxu0  ;;  %v3193_v10 = vpop.f32.mrb[11].mxu1 }
 0x105   : > { %v4057_v11 = vpop.f32.mrb[12].mxu0  ;;  %v4059_v13 = vpop.f32.mrb[12].mxu1 }
 0x106   : > { %v3200_v12 = vpop.f32.mrb[13].mxu0  ;;  %v3208_v15 = vpop.f32.mrb[13].mxu1  ;;  %v1589_v5 = vpack.c.bf16 %v4057_v11, %v4057_v11 }
 0x107   : > { %v696_v14 = vpop.f32.mrb[14].mxu0  ;;  %v748_v17 = vpop.f32.mrb[14].mxu1  ;;  %v1590_v12 = vpack.c.bf16 %v4059_v13, %v4059_v13 }
 0x108   : > { %v3201_v16 = vpop.f32.mrb[15].mxu0  ;;  %v3209_v18 = vpop.f32.mrb[15].mxu1 }
 0x10d   : > { %v797_v19 = vpop.f32.mrb[16].mxu0  ;;  %v849_v21 = vpop.f32.mrb[16].mxu1 }
 0x10e   : > { %v1591_v20 = vpack.c.bf16 %v797_v19, %v797_v19  ;;  %v3216_v22 = vpop.f32.mrb[17].mxu0  ;;  %v1592_v23 = vpack.c.bf16 %v849_v21, %v849_v21  ;;  %v3224_v25 = vpop.f32.mrb[17].mxu1 }
 0x10f   : > { %v800_v24 = vpop.f32.mrb[18].mxu0  ;;  %v852_v28 = vpop.f32.mrb[18].mxu1 }
 0x110   : > { %v1604_v26 = vsel %vm1599_vm2, %v1591_v20, 0  ;;  %v3217_v27 = vpop.f32.mrb[19].mxu0  ;;  %v1650_v29 = vsel %vm1599_vm2, %v1592_v23, 0  ;;  %v3225_v30 = vpop.f32.mrb[19].mxu1 }
 0x111   : > { %3339 = vmatpush3.bf16.xpose.msra.mxu0 %v1604_v26  ;;  %3345 = vmatpush3.bf16.xpose.msra.mxu1 %v1650_v29 }
 0x112   : > { %3350 = vmatprep.subr.bf16.mxu0 %v3667_v1  ;;  %3356 = vmatprep.subr.bf16.mxu1 %v3667_v1 }
 0x115   : > { %v901_v31 = vpop.f32.mrb[20].mxu0  ;;  %v953_v34 = vpop.f32.mrb[20].mxu1 }
 0x116   : > { %v1593_v33 = vpack.c.bf16 %v901_v31, %v901_v31  ;;  %v3232_v35 = vpop.f32.mrb[21].mxu0  ;;  %v1594_v37 = vpack.c.bf16 %v953_v34, %v953_v34  ;;  %v3240_v39 = vpop.f32.mrb[21].mxu1 }
 0x117   : > { %v904_v38 = vpop.f32.mrb[22].mxu0  ;;  %v956_v42 = vpop.f32.mrb[22].mxu1 }
 0x118   : > { %v1696_v40 = vsel %vm1599_vm2, %v1593_v33, 0  ;;  %v3233_v41 = vpop.f32.mrb[23].mxu0  ;;  %3341 = vmatmul.mubr.msk.bf16.vlgmr.msra.gmra.mrb[48].mxu0 %vm1599_vm2, %v1583_v32  ;;  %v1742_v43 = vsel %vm1599_vm2, %v1594_v37, 0  ;;  %3347 = vmatmul.mubr.msk.bf16.vlgmr.msra.gmra.mrb[48].mxu1 %vm1599_vm2, %v1584_v36  ;;  %v3241_v44 = vpop.f32.mrb[23].mxu1 }
 0x119   : > { %3351 = vmatpush3.bf16.xpose.msra.mxu0 %v1696_v40  ;;  %3357 = vmatpush3.bf16.xpose.msra.mxu1 %v1742_v43 }
 0x11a   : > { %3352 = vmatprep.mubr.msk.bf16.mxu0 %vm3668_vm0, %v3667_v1  ;;  %3358 = vmatprep.mubr.msk.bf16.mxu1 %vm3668_vm0, %v3667_v1 }
 0x11b   : > { %3362 = vmatprep.subr.bf16.mxu0 %v3667_v1  ;;  %3368 = vmatprep.subr.bf16.mxu1 %v3667_v1 }
 0x11d   : > { %v1005_v45 = vpop.f32.mrb[24].mxu0  ;;  %v1057_v48 = vpop.f32.mrb[24].mxu1 }
 0x11e   : > { %v1595_v47 = vpack.c.bf16 %v1005_v45, %v1005_v45  ;;  %v3248_v49 = vpop.f32.mrb[25].mxu0  ;;  %v1596_v51 = vpack.c.bf16 %v1057_v48, %v1057_v48  ;;  %v3256_v53 = vpop.f32.mrb[25].mxu1 }
 0x11f   : > { %v1008_v52 = vpop.f32.mrb[26].mxu0  ;;  %v1060_v56 = vpop.f32.mrb[26].mxu1 }
 0x120   : > { %v1788_v54 = vsel %vm1599_vm2, %v1595_v47, 0  ;;  %v3249_v55 = vpop.f32.mrb[27].mxu0  ;;  %3353 = vmatmul.mubr.msk.bf16.vlgmr.msra.gmra.mrb[52].mxu0 %vm1599_vm2, %v1585_v46  ;;  %v1834_v57 = vsel %vm1599_vm2, %v1596_v51, 0  ;;  %3359 = vmatmul.mubr.msk.bf16.vlgmr.msra.gmra.mrb[52].mxu1 %vm1599_vm2, %v1586_v50  ;;  %v3257_v58 = vpop.f32.mrb[27].mxu1 }
 0x121   : > { %3363 = vmatpush3.bf16.xpose.msra.mxu0 %v1788_v54  ;;  %3369 = vmatpush3.bf16.xpose.msra.mxu1 %v1834_v57 }
 0x122   : > { %3364 = vmatprep.mubr.msk.bf16.mxu0 %vm3668_vm0, %v3667_v1  ;;  %3370 = vmatprep.mubr.msk.bf16.mxu1 %vm3668_vm0, %v3667_v1 }
 0x123   : > { %3374 = vmatprep.subr.bf16.mxu0 %v3667_v1  ;;  %3380 = vmatprep.subr.bf16.mxu1 %v3667_v1 }
 0x125   : > { %v1109_v59 = vpop.f32.mrb[28].mxu0  ;;  %v1161_v62 = vpop.f32.mrb[28].mxu1 }
 0x126   : > { %v1597_v61 = vpack.c.bf16 %v1109_v59, %v1109_v59  ;;  %v3264_v63 = vpop.f32.mrb[29].mxu0  ;;  %v1598_v2 = vpack.c.bf16 %v1161_v62, %v1161_v62  ;;  %v3272_v6 = vpop.f32.mrb[29].mxu1 }
 0x127   : > { %v1112_v4 = vpop.f32.mrb[30].mxu0  ;;  %v1164_v9 = vpop.f32.mrb[30].mxu1 }
 0x128   : > { %v1880_v7 = vsel %vm1599_vm2, %v1597_v61, 0  ;;  %v3265_v8 = vpop.f32.mrb[31].mxu0  ;;  %3365 = vmatmul.mubr.msk.bf16.vlgmr.msra.gmra.mrb[56].mxu0 %vm1599_vm2, %v1587_v60  ;;  %v1926_v10 = vsel %vm1599_vm2, %v1598_v2, 0  ;;  %3371 = vmatmul.mubr.msk.bf16.vlgmr.msra.gmra.mrb[56].mxu1 %vm1599_vm2, %v1588_v0  ;;  %v3273_v3 = vpop.f32.mrb[31].mxu1  ;;  %v325_v60 = vlaneseq }
 0x129   : > { %3375 = vmatpush3.bf16.xpose.msra.mxu0 %v1880_v7  ;;  %3381 = vmatpush3.bf16.xpose.msra.mxu1 %v1926_v10 }
 0x12a   : > { %3376 = vmatprep.mubr.msk.bf16.mxu0 %vm3668_vm0, %v3667_v1  ;;  %3382 = vmatprep.mubr.msk.bf16.mxu1 %vm3668_vm0, %v3667_v1  ;;  %v326_v61 = vshrl.u32 %v325_v60, 7  ;;  %v328_v62 = vand.u32 127, %v325_v60 }
 0x12b   : > { %3386 = vmatprep.subr.bf16.mxu0 %v3667_v1  ;;  %3392 = vmatprep.subr.bf16.mxu1 %v3667_v1 }
 0x12c   : > { %vm4135_vm4 = vcmp.le.s32.totalorder %v328_v62, %v326_v61 }
 0x12d   : > { %v1213_v14 = vpop.f32.mrb[32].mxu0  ;;  %v1265_v18 = vpop.f32.mrb[32].mxu1 }
 0x12e   : > { %v2075_v15 = vpack.c.bf16 %v1213_v14, %v1213_v14  ;;  %v3280_v16 = vpop.f32.mrb[33].mxu0  ;;  %v2076_v13 = vpack.c.bf16 %v1265_v18, %v1265_v18  ;;  %v3288_v20 = vpop.f32.mrb[33].mxu1 }
 0x12f   : > { %v1216_v17 = vpop.f32.mrb[34].mxu0  ;;  %v1268_v21 = vpop.f32.mrb[34].mxu1 }
 0x130   : > { %3377 = vmatmul.mubr.msk.bf16.vlgmr.msra.gmra.mrb[60].mxu0 %vm1599_vm2, %v1589_v5  ;;  %3383 = vmatmul.mubr.msk.bf16.vlgmr.msra.gmra.mrb[60].mxu1 %vm1599_vm2, %v1590_v12  ;;  %v2088_v11 = vsel %vm2086_vm3, %v2075_v15, 0  ;;  %v3281_v19 = vpop.f32.mrb[35].mxu0  ;;  %v2134_v22 = vsel %vm2086_vm3, %v2076_v13, 0  ;;  %v3289_v23 = vpop.f32.mrb[35].mxu1 }
 0x131   : > { %3388 = vmatprep.mubr.msk.bf16.mxu0 %vm3668_vm0, %v3667_v1  ;;  %3394 = vmatprep.mubr.msk.bf16.mxu1 %vm3668_vm0, %v3667_v1 }
 0x132   : > { %3387 = vmatpush3.bf16.msra.mxu0 %v2088_v11  ;;  %3393 = vmatpush3.bf16.msra.mxu1 %v2134_v22 }
 0x133   : > { %3398 = vmatprep.subr.bf16.mxu0 %v3667_v1  ;;  %3404 = vmatprep.subr.bf16.mxu1 %v3667_v1 }
 0x135   : > { %v1317_v24 = vpop.f32.mrb[36].mxu0 }
 0x136   : > { %v2077_v25 = vpack.c.bf16 %v1317_v24, %v1317_v24  ;;  %v3296_v26 = vpop.f32.mrb[37].mxu0 }
 0x137   : > { %v1320_v27 = vpop.f32.mrb[38].mxu0  ;;  %v1369_v28 = vpop.f32.mrb[36].mxu1 }
 0x138   : > { %v4118_v29 = vsel %vm2086_vm3, %v2077_v25, 0  ;;  %v3297_v30 = vpop.f32.mrb[39].mxu0  ;;  %v2078_v31 = vpack.c.bf16 %v1369_v28, %v1369_v28  ;;  %v3304_v32 = vpop.f32.mrb[37].mxu1 }
 0x139   : > { %v1372_v33 = vpop.f32.mrb[38].mxu1 }
 0x13a   : > { %v4121_v34 = vsel %vm2086_vm3, %v2078_v31, 0  ;;  %v3305_v35 = vpop.f32.mrb[39].mxu1 }
 0x13d   : > { %v1421_v36 = vpop.f32.mrb[40].mxu0 }
 0x13e   : > { %v2079_v37 = vpack.c.bf16 %v1421_v36, %v1421_v36  ;;  %v3312_v38 = vpop.f32.mrb[41].mxu0 }
 0x13f   : > { %v1424_v39 = vpop.f32.mrb[42].mxu0  ;;  %v1473_v40 = vpop.f32.mrb[40].mxu1 }
 0x140   : > { %v4124_v41 = vsel %vm2086_vm3, %v2079_v37, 0  ;;  %v3313_v42 = vpop.f32.mrb[43].mxu0  ;;  %v2080_v43 = vpack.c.bf16 %v1473_v40, %v1473_v40  ;;  %v3320_v44 = vpop.f32.mrb[41].mxu1 }
 0x141   : > { %v1476_v45 = vpop.f32.mrb[42].mxu1 }
 0x142   : > { %v4127_v46 = vsel %vm2086_vm3, %v2080_v43, 0  ;;  %v3321_v47 = vpop.f32.mrb[43].mxu1 }
 0x145   : > { %v1525_v48 = vpop.f32.mrb[44].mxu0 }
 0x146   : > { %v2081_v50 = vpack.c.bf16 %v1525_v48, %v1525_v48  ;;  %v3328_v51 = vpop.f32.mrb[45].mxu0 }
 0x147   : > { %v1577_v49 = vpop.f32.mrb[44].mxu1  ;;  %v1528_v54 = vpop.f32.mrb[46].mxu0 }
 0x148   : > { %v2082_v52 = vpack.c.bf16 %v1577_v49, %v1577_v49  ;;  %v3336_v53 = vpop.f32.mrb[45].mxu1  ;;  %v4130_v56 = vsel %vm2086_vm3, %v2081_v50, 0  ;;  %v3329_v57 = vpop.f32.mrb[47].mxu0 }
 0x149   : > { %v1580_v55 = vpop.f32.mrb[46].mxu1 }
 0x14a   : > { %v4133_v58 = vsel %vm2086_vm3, %v2082_v52, 0  ;;  %v3337_v59 = vpop.f32.mrb[47].mxu1 }
 0x1eb   : > { %v1640_v0 = vpop.f32.mrb[48].mxu0  ;;  %v1686_v4 = vpop.f32.mrb[48].mxu1 }
 0x1ec   : > { %v1970_v2 = vsel %vm4135_vm4, %v1640_v0, -1e+30  ;;  %v3342_v6 = vpop.f32.mrb[49].mxu0  ;;  %v3348_v7 = vpop.f32.mrb[49].mxu1  ;;  %v1971_v10 = vsel %vm4135_vm4, %v1686_v4, -1e+30 }
 0x1ed   : > { %v1643_v8 = vpop.f32.mrb[50].mxu0  ;;  %v1979_v9 = vsel %vm1978_vm5, %v1970_v2, -inf  ;;  %v1689_v3 = vpop.f32.mrb[50].mxu1  ;;  %v1982_v14 = vsel %vm1978_vm5, %v1971_v10, -inf }
 0x1ee   : > { %1980 = vmax.xlane.f32.xlu0 %v1979_v9  ;;  %v3343_v5 = vpop.f32.mrb[51].mxu0  ;;  %v3349_v12 = vpop.f32.mrb[51].mxu1 }
 0x1f2   : > { %1983 = vmax.xlane.f32.xlu0 %v1982_v14 }
 0x1f3   : > { %v1732_v15 = vpop.f32.mrb[52].mxu0  ;;  %v1778_v17 = vpop.f32.mrb[52].mxu1 }
 0x1f4   : > { %v1972_v16 = vsel %vm4135_vm4, %v1732_v15, -1e+30  ;;  %v3354_v18 = vpop.f32.mrb[53].mxu0  ;;  %v3360_v11 = vpop.f32.mrb[53].mxu1  ;;  %v1973_v20 = vsel %vm4135_vm4, %v1778_v17, -1e+30 }
 0x1f5   : > { %v1735_v19 = vpop.f32.mrb[54].mxu0  ;;  %v1985_v13 = vsel %vm1978_vm5, %v1972_v16, -inf  ;;  %v1781_v21 = vpop.f32.mrb[54].mxu1  ;;  %v1988_v24 = vsel %vm1978_vm5, %v1973_v20, -inf }
 0x1f6   : > { %1986 = vmax.xlane.f32.xlu1 %v1985_v13  ;;  %v3355_v22 = vpop.f32.mrb[55].mxu0  ;;  %v3361_v23 = vpop.f32.mrb[55].mxu1 }
 0x1fa   : > { %1989 = vmax.xlane.f32.xlu1 %v1988_v24 }
 0x1fb   : > { %v1824_v25 = vpop.f32.mrb[56].mxu0  ;;  %v1870_v27 = vpop.f32.mrb[56].mxu1 }
 0x1fc   : > { %v1974_v26 = vsel %vm4135_vm4, %v1824_v25, -1e+30  ;;  %v3366_v28 = vpop.f32.mrb[57].mxu0  ;;  %v1975_v30 = vsel %vm4135_vm4, %v1870_v27, -1e+30  ;;  %v3372_v31 = vpop.f32.mrb[57].mxu1 }
 0x1fd   : > { %v1827_v32 = vpop.f32.mrb[58].mxu0  ;;  %v1991_v33 = vsel %vm1978_vm5, %v1974_v26, -inf  ;;  %v1873_v35 = vpop.f32.mrb[58].mxu1  ;;  %v1994_v36 = vsel %vm1978_vm5, %v1975_v30, -inf }
 0x1fe   : > { %1992 = vmax.xlane.f32.xlu0 %v1991_v33  ;;  %v3367_v37 = vpop.f32.mrb[59].mxu0  ;;  %v3373_v38 = vpop.f32.mrb[59].mxu1  ;;  %1995 = vmax.xlane.f32.xlu1 %v1994_v36 }
 0x203   : > { %v1916_v39 = vpop.f32.mrb[60].mxu0  ;;  %v1962_v42 = vpop.f32.mrb[60].mxu1 }
 0x204   : > { %v1976_v40 = vsel %vm4135_vm4, %v1916_v39, -1e+30  ;;  %v3378_v43 = vpop.f32.mrb[61].mxu0  ;;  %v1977_v44 = vsel %vm4135_vm4, %v1962_v42, -1e+30  ;;  %v3384_v45 = vpop.f32.mrb[61].mxu1 }
 0x205   : > { %v1919_v47 = vpop.f32.mrb[62].mxu0  ;;  %v1997_v48 = vsel %vm1978_vm5, %v1976_v40, -inf  ;;  %v1965_v49 = vpop.f32.mrb[62].mxu1  ;;  %v2000_v50 = vsel %vm1978_vm5, %v1977_v44, -inf }
 0x206   : > { %1998 = vmax.xlane.f32.xlu0 %v1997_v48  ;;  %v3379_v51 = vpop.f32.mrb[63].mxu0  ;;  %v3385_v52 = vpop.f32.mrb[63].mxu1  ;;  %2001 = vmax.xlane.f32.xlu1 %v2000_v50 }
 0x27b   : > { %v1981_v53 = vpop.xlane.xlu0 %1980 }
 0x27c   : > { %v2003_v54 = vsub.f32 %v1970_v2, %v1981_v53 }
 0x27e   : > { %v2011_v55 = vmul.f32 1.442695, %v2003_v54 }
 0x27f   : > { %v1984_v57 = vpop.xlane.xlu0 %1983 }
 0x280   : > { %3571 = vpow2.f32 %v2011_v55  ;;  %v2004_v59 = vsub.f32 %v1971_v10, %v1984_v57 }
 0x282   : > { %v2013_v60 = vmul.f32 1.442695, %v2004_v59 }
 0x283   : > { %v1987_v61 = vpop.xlane.xlu1 %1986 }
 0x284   : > { %3573 = vpow2.f32 %v2013_v60  ;;  %v2005_v62 = vsub.f32 %v1972_v16, %v1987_v61 }
 0x286   : > { %v2015_v63 = vmul.f32 1.442695, %v2005_v62 }
 0x287   : > { %v1990_v0 = vpop.xlane.xlu1 %1989 }
 0x288   : > { %3575 = vpow2.f32 %v2015_v63  ;;  %v2006_v4 = vsub.f32 %v1973_v20, %v1990_v0 }
 0x28a   : > { %v3572_v6 = vpop.eup %3571  ;;  %v2017_v7 = vmul.f32 1.442695, %v2006_v4 }
 0x28b   : > { %v1993_v8 = vpop.xlane.xlu0 %1992  ;;  %v2027_v9 = vsel %vm1978_vm5, %v3572_v6, 0.0  ;;  %v1996_v3 = vpop.xlane.xlu1 %1995 }
 0x28c   : > { %3577 = vpow2.f32 %v2017_v7  ;;  %v2007_v2 = vsub.f32 %v1974_v26, %v1993_v8  ;;  %2028 = vadd.xlane.f32.xlu0 %v2027_v9  ;;  %v2008_v5 = vsub.f32 %v1975_v30, %v1996_v3  ;;  %v319_v8 = vld [vmem:[%s4332_s4 + $0x4] sm:$0x3] }
 0x28e   : > { %v3574_v12 = vpop.eup %3573  ;;  %v2019_v10 = vmul.f32 1.442695, %v2007_v2  ;;  %v2021_v14 = vmul.f32 1.442695, %v2008_v5  ;;  %v2557_v5 = vsel %vm2463_vm6, %v319_v8, 0 }
 0x28f   : > { %v2030_v15 = vsel %vm1978_vm5, %v3574_v12, 0.0 }
 0x290   : > { %3579 = vpow2.f32 %v2019_v10  ;;  %2031 = vadd.xlane.f32.xlu1 %v2030_v15  ;;  %v320_v10 = vld [vmem:[%s4332_s4 + $0x6] sm:$0x3] }
 0x291   : > { %3581 = vpow2.f32 %v2021_v14 }
 0x292   : > { %v3576_v16 = vpop.eup %3575 }
 0x293   : > { %v1999_v17 = vpop.xlane.xlu0 %1998  ;;  %v2033_v18 = vsel %vm1978_vm5, %v3576_v16, 0.0  ;;  %v2002_v11 = vpop.xlane.xlu1 %2001 }
 0x294   : > { %v2009_v19 = vsub.f32 %v1976_v40, %v1999_v17  ;;  %2034 = vadd.xlane.f32.xlu0 %v2033_v18  ;;  %v2010_v13 = vsub.f32 %v1977_v44, %v2002_v11  ;;  %v2603_v18 = vsel %vm2463_vm6, %v320_v10, 0 }
 0x296   : > { %v3578_v20 = vpop.eup %3577  ;;  %v2023_v21 = vmul.f32 1.442695, %v2009_v19  ;;  %v2025_v22 = vmul.f32 1.442695, %v2010_v13  ;;  %v321_v19 = vld [vmem:[%s4332_s4 + $0x8] sm:$0x3] }
 0x297   : > { %v2036_v23 = vsel %vm1978_vm5, %v3578_v20, 0.0 }
 0x298   : > { %3583 = vpow2.f32 %v2023_v21  ;;  %2037 = vadd.xlane.f32.xlu1 %v2036_v23  ;;  %v2649_v23 = vsel %vm2463_vm6, %v321_v19, 0 }
 0x299   : > { %3585 = vpow2.f32 %v2025_v22 }
 0x29a   : > { %v3580_v24 = vpop.eup %3579 }
 0x29b   : > { %v3582_v25 = vpop.eup %3581  ;;  %v2039_v26 = vsel %vm1978_vm5, %v3580_v24, 0.0 }
 0x29c   : > { %v2042_v27 = vsel %vm1978_vm5, %v3582_v25, 0.0  ;;  %2040 = vadd.xlane.f32.xlu0 %v2039_v26 }
 0x29d   : > { %2043 = vadd.xlane.f32.xlu1 %v2042_v27 }
 0x2a2   : > { %v4169_v28 = vpop.eup %3583 }
 0x2a3   : > { %v4171_v30 = vpop.eup %3585  ;;  %v2045_v31 = vsel %vm1978_vm5, %v4169_v28, 0.0 }
 0x2a4   : > { %v2048_v32 = vsel %vm1978_vm5, %v4171_v30, 0.0  ;;  %2046 = vadd.xlane.f32.xlu0 %v2045_v31 }
 0x2a5   : > { %2049 = vadd.xlane.f32.xlu1 %v2048_v32 }
 0x319   : > { %v2029_v33 = vpop.xlane.xlu0 %2028 }
 0x31a   : > { %3587 = vrcp.f32 %v2029_v33  ;;  %v323_v33 = vld [vmem:[%s4332_s4 + $0xc] sm:$0x3] }
 0x31d   : > { %v2032_v35 = vpop.xlane.xlu1 %2031 }
 0x31e   : > { %3589 = vrcp.f32 %v2032_v35 }
 0x321   : > { %v2035_v36 = vpop.xlane.xlu0 %2034 }
 0x322   : > { %3591 = vrcp.f32 %v2035_v36 }
 0x324   : > { %v3588_v37 = vpop.eup %3587 }
 0x325   : > { %v2059_v38 = vmul.f32 %v3588_v37, %v3572_v6  ;;  %v2038_v39 = vpop.xlane.xlu1 %2037 }
 0x326   : > { %3593 = vrcp.f32 %v2038_v39  ;;  %v2741_v39 = vsel %vm2463_vm6, %v323_v33, 0 }
 0x327   : > { %v2067_v40 = vpack.c.bf16 %v2059_v38, %v2059_v38 }
 0x328   : > { %v3590_v42 = vpop.eup %3589 }
 0x329   : > { %v2060_v43 = vmul.f32 %v3590_v42, %v3574_v12  ;;  %3389 = vmatmul.mubr.msk.bf16.vlgmr.msra.gmra.mrb[64].mxu0 %vm1978_vm5, %v2067_v40  ;;  %v2041_v44 = vpop.xlane.xlu0 %2040  ;;  %v324_v42 = vld [vmem:[%s4332_s4 + $0xe] sm:$0x3] }
 0x32a   : > { %v2044_v45 = vpop.xlane.xlu1 %2043  ;;  %3399 = vmatpush3.bf16.msra.mxu0 %v4118_v29  ;;  %3595 = vrcp.f32 %v2041_v44  ;;  %3400 = vmatprep.mubr.msk.bf16.mxu0 %vm3668_vm0, %v3667_v1 }
 0x32b   : > { %3597 = vrcp.f32 %v2044_v45  ;;  %v2068_v47 = vpack.c.bf16 %v2060_v43, %v2060_v43  ;;  %3410 = vmatprep.subr.bf16.mxu0 %v3667_v1 }
 0x32c   : > { %v3592_v48 = vpop.eup %3591 }
 0x32d   : > { %v2061_v49 = vmul.f32 %v3592_v48, %v3576_v16  ;;  %3395 = vmatmul.mubr.msk.bf16.vlgmr.msra.gmra.mrb[64].mxu1 %vm1978_vm5, %v2068_v47  ;;  %v2787_v48 = vsel %vm2463_vm6, %v324_v42, 0 }
 0x32e   : > { %3405 = vmatpush3.bf16.msra.mxu1 %v4121_v34  ;;  %3406 = vmatprep.mubr.msk.bf16.mxu1 %vm3668_vm0, %v3667_v1 }
 0x32f   : > { %v2069_v50 = vpack.c.bf16 %v2061_v49, %v2061_v49  ;;  %3416 = vmatprep.subr.bf16.mxu1 %v3667_v1 }
 0x330   : > { %v3594_v29 = vpop.eup %3593 }
 0x331   : > { %v2062_v51 = vmul.f32 %v3594_v29, %v3578_v20  ;;  %3401 = vmatmul.mubr.msk.bf16.vlgmr.msra.gmra.mrb[68].mxu0 %vm1978_vm5, %v2069_v50  ;;  %v2047_v52 = vpop.xlane.xlu0 %2046 }
 0x332   : > { %v2050_v53 = vpop.xlane.xlu1 %2049  ;;  %3411 = vmatpush3.bf16.msra.mxu0 %v4124_v41  ;;  %3599 = vrcp.f32 %v2047_v52  ;;  %3412 = vmatprep.mubr.msk.bf16.mxu0 %vm3668_vm0, %v3667_v1 }
 0x333   : > { %3601 = vrcp.f32 %v2050_v53  ;;  %v2070_v34 = vpack.c.bf16 %v2062_v51, %v2062_v51  ;;  %3422 = vmatprep.subr.bf16.mxu0 %v3667_v1 }
 0x334   : > { %v3596_v54 = vpop.eup %3595 }
 0x335   : > { %v3598_v55 = vpop.eup %3597  ;;  %v2063_v57 = vmul.f32 %v3596_v54, %v3580_v24  ;;  %3407 = vmatmul.mubr.msk.bf16.vlgmr.msra.gmra.mrb[68].mxu1 %vm1978_vm5, %v2070_v34 }
 0x336   : > { %3417 = vmatpush3.bf16.msra.mxu1 %v4127_v46  ;;  %3418 = vmatprep.mubr.msk.bf16.mxu1 %vm3668_vm0, %v3667_v1  ;;  %v2064_v59 = vmul.f32 %v3598_v55, %v3582_v25  ;;  %v317_v46 = vld [vmem:[%s4332_s4] sm:$0x3]  ;;  %v322_v25 = vld [vmem:[%s4332_s4 + $0xa] sm:$0x3] }
 0x337   : > { %v2071_v41 = vpack.c.bf16 %v2063_v57, %v2063_v57  ;;  %3428 = vmatprep.subr.bf16.mxu1 %v3667_v1  ;;  %v2465_v4 = vsel %vm2463_vm6, %v317_v46, 0  ;;  %v2695_v31 = vsel %vm2463_vm6, %v322_v25, 0 }
 0x338   : > { %v2072_v60 = vpack.c.bf16 %v2064_v59, %v2064_v59 }
 0x339   : > { %3413 = vmatmul.mubr.msk.bf16.vlgmr.msra.gmra.mrb[72].mxu0 %vm1978_vm5, %v2071_v41 }
 0x33a   : > { %3423 = vmatpush3.bf16.msra.mxu0 %v4130_v56  ;;  %3424 = vmatprep.mubr.msk.bf16.mxu0 %vm3668_vm0, %v3667_v1 }
 0x33b   : > { %3434 = vmatprep.subr.bf16.mxu0 %v3667_v1 }
 0x33c   : > { %v3600_v61 = vpop.eup %3599 }
 0x33d   : > { %v3602_v62 = vpop.eup %3601  ;;  %v2065_v63 = vmul.f32 %v3600_v61, %v4169_v28  ;;  %3419 = vmatmul.mubr.msk.bf16.vlgmr.msra.gmra.mrb[72].mxu1 %vm1978_vm5, %v2072_v60 }
 0x33e   : > { %3429 = vmatpush3.bf16.msra.mxu1 %v4133_v58  ;;  %3430 = vmatprep.mubr.msk.bf16.mxu1 %vm3668_vm0, %v3667_v1  ;;  %v2066_v56 = vmul.f32 %v3602_v62, %v4171_v30  ;;  %v318_v58 = vld [vmem:[%s4332_s4 + $0x2] sm:$0x3] }
 0x33f   : > { %v2073_v0 = vpack.c.bf16 %v2065_v63, %v2065_v63  ;;  %3440 = vmatprep.subr.bf16.mxu1 %v3667_v1  ;;  %v2511_v7 = vsel %vm2463_vm6, %v318_v58, 0 }
 0x340   : > { %v2074_v6 = vpack.c.bf16 %v2066_v56, %v2066_v56 }
 0x341   : > { %3425 = vmatmul.mubr.msk.bf16.vlgmr.msra.gmra.mrb[76].mxu0 %vm1978_vm5, %v2073_v0 }
 0x342   : > { %3435 = vmatpush3.bf16.msra.mxu0 %v2465_v4  ;;  %3436 = vmatprep.mubr.msk.bf16.mxu0 %vm3668_vm0, %v3667_v1 }
 0x343   : > { %3446 = vmatprep.subr.bf16.mxu0 %v3667_v1 }
 0x345   : > { %3431 = vmatmul.mubr.msk.bf16.vlgmr.msra.gmra.mrb[76].mxu1 %vm1978_vm5, %v2074_v6 }
 0x346   : > { %3442 = vmatprep.mubr.msk.bf16.mxu1 %vm3668_vm0, %v3667_v1  ;;  %3441 = vmatpush3.bf16.msra.mxu1 %v2511_v7 }
 0x347   : > { %3452 = vmatprep.subr.bf16.mxu1 %v3667_v1 }
 0x3fc   : > { %v2124_v9 = vpop.f32.mrb[64].mxu0 }
 0x3fd   : > { %v2452_v3 = vpack.c.bf16 %v2124_v9, %v2124_v9  ;;  %v3390_v2 = vpop.f32.mrb[65].mxu0 }
 0x3fe   : > { %v2127_v12 = vpop.f32.mrb[66].mxu0 }
 0x3ff   : > { %v3391_v14 = vpop.f32.mrb[67].mxu0  ;;  %3437 = vmatmul.mubr.msk.bf16.vlgmr.msra.gmra.mrb[80].mxu0 %vm1599_vm2, %v2452_v3 }
 0x400   : > { %v2170_v15 = vpop.f32.mrb[64].mxu1  ;;  %3447 = vmatpush3.bf16.msra.mxu0 %v2557_v5  ;;  %3448 = vmatprep.mubr.msk.bf16.mxu0 %vm3668_vm0, %v3667_v1 }
 0x401   : > { %v2453_v16 = vpack.c.bf16 %v2170_v15, %v2170_v15  ;;  %v3396_v17 = vpop.f32.mrb[65].mxu1  ;;  %3458 = vmatprep.subr.bf16.mxu0 %v3667_v1 }
 0x402   : > { %v2173_v11 = vpop.f32.mrb[66].mxu1 }
 0x403   : > { %v3397_v13 = vpop.f32.mrb[67].mxu1  ;;  %3443 = vmatmul.mubr.msk.bf16.vlgmr.msra.gmra.mrb[80].mxu1 %vm1599_vm2, %v2453_v16 }
 0x404   : > { %v2216_v20 = vpop.f32.mrb[68].mxu0  ;;  %3453 = vmatpush3.bf16.msra.mxu1 %v2603_v18  ;;  %3454 = vmatprep.mubr.msk.bf16.mxu1 %vm3668_vm0, %v3667_v1 }
 0x405   : > { %v2454_v21 = vpack.c.bf16 %v2216_v20, %v2216_v20  ;;  %v3402_v22 = vpop.f32.mrb[69].mxu0  ;;  %3464 = vmatprep.subr.bf16.mxu1 %v3667_v1 }
 0x406   : > { %v2219_v24 = vpop.f32.mrb[70].mxu0 }
 0x407   : > { %v3403_v26 = vpop.f32.mrb[71].mxu0  ;;  %3449 = vmatmul.mubr.msk.bf16.vlgmr.msra.gmra.mrb[84].mxu0 %vm1599_vm2, %v2454_v21 }
 0x408   : > { %v2262_v27 = vpop.f32.mrb[68].mxu1  ;;  %3459 = vmatpush3.bf16.msra.mxu0 %v2649_v23  ;;  %3460 = vmatprep.mubr.msk.bf16.mxu0 %vm3668_vm0, %v3667_v1 }
 0x409   : > { %v2455_v28 = vpack.c.bf16 %v2262_v27, %v2262_v27  ;;  %v3408_v30 = vpop.f32.mrb[69].mxu1  ;;  %3470 = vmatprep.subr.bf16.mxu0 %v3667_v1 }
 0x40a   : > { %v2265_v32 = vpop.f32.mrb[70].mxu1 }
 0x40b   : > { %v3409_v35 = vpop.f32.mrb[71].mxu1  ;;  %3455 = vmatmul.mubr.msk.bf16.vlgmr.msra.gmra.mrb[84].mxu1 %vm1599_vm2, %v2455_v28 }
 0x40c   : > { %v2308_v36 = vpop.f32.mrb[72].mxu0  ;;  %3465 = vmatpush3.bf16.msra.mxu1 %v2695_v31  ;;  %3466 = vmatprep.mubr.msk.bf16.mxu1 %vm3668_vm0, %v3667_v1 }
 0x40d   : > { %v2456_v37 = vpack.c.bf16 %v2308_v36, %v2308_v36  ;;  %v3414_v38 = vpop.f32.mrb[73].mxu0  ;;  %3476 = vmatprep.subr.bf16.mxu1 %v3667_v1 }
 0x40e   : > { %v2311_v40 = vpop.f32.mrb[74].mxu0 }
 0x40f   : > { %v3415_v43 = vpop.f32.mrb[75].mxu0  ;;  %3461 = vmatmul.mubr.msk.bf16.vlgmr.msra.gmra.mrb[88].mxu0 %vm1599_vm2, %v2456_v37 }
 0x410   : > { %v2354_v44 = vpop.f32.mrb[72].mxu1  ;;  %3471 = vmatpush3.bf16.msra.mxu0 %v2741_v39  ;;  %3472 = vmatprep.mubr.msk.bf16.mxu0 %vm3668_vm0, %v3667_v1 }
 0x411   : > { %v2457_v45 = vpack.c.bf16 %v2354_v44, %v2354_v44  ;;  %v3420_v47 = vpop.f32.mrb[73].mxu1 }
 0x412   : > { %v2357_v49 = vpop.f32.mrb[74].mxu1 }
 0x413   : > { %v3421_v50 = vpop.f32.mrb[75].mxu1  ;;  %3467 = vmatmul.mubr.msk.bf16.vlgmr.msra.gmra.mrb[88].mxu1 %vm1599_vm2, %v2457_v45 }
 0x414   : > { %v2400_v29 = vpop.f32.mrb[76].mxu0  ;;  %3477 = vmatpush3.bf16.msra.mxu1 %v2787_v48  ;;  %3478 = vmatprep.mubr.msk.bf16.mxu1 %vm3668_vm0, %v3667_v1 }
 0x415   : > { %v2458_v51 = vpack.c.bf16 %v2400_v29, %v2400_v29  ;;  %v3426_v52 = vpop.f32.mrb[77].mxu0 }
 0x416   : > { %v2403_v53 = vpop.f32.mrb[78].mxu0 }
 0x417   : > { %v3427_v34 = vpop.f32.mrb[79].mxu0  ;;  %3473 = vmatmul.mubr.msk.bf16.vlgmr.msra.gmra.mrb[92].mxu0 %vm1599_vm2, %v2458_v51 }
 0x418   : > { %v2446_v54 = vpop.f32.mrb[76].mxu1 }
 0x419   : > { %v2459_v55 = vpack.c.bf16 %v2446_v54, %v2446_v54  ;;  %v3432_v57 = vpop.f32.mrb[77].mxu1 }
 0x41a   : > { %v2449_v59 = vpop.f32.mrb[78].mxu1 }
 0x41b   : > { %v3433_v41 = vpop.f32.mrb[79].mxu1  ;;  %3479 = vmatmul.mubr.msk.bf16.vlgmr.msra.gmra.mrb[92].mxu1 %vm1599_vm2, %v2459_v55 }
 0x4d2   : > { %v2501_v60 = vpop.f32.mrb[80].mxu0 }
 0x4d3   : > { %v3438_v61 = vpop.f32.mrb[81].mxu0  ;;  %v2829_v1 = vsel %vm343_vm1, %v2501_v60, 0.0 }
 0x4d4   : > { %v2504_v46 = vpop.f32.mrb[82].mxu0 }
 0x4d5   : > { %v3439_v62 = vpop.f32.mrb[83].mxu0 }
 0x4d6   : > { %v2547_v63 = vpop.f32.mrb[80].mxu1 }
 0x4d7   : > { %v2830_v56 = vsel %vm343_vm1, %v2547_v63, 0.0  ;;  %v3444_v0 = vpop.f32.mrb[81].mxu1 }
 0x4d8   : > { %v2831_v4 = vadd.f32 %v2830_v56, %v2829_v1  ;;  %v2550_v6 = vpop.f32.mrb[82].mxu1 }
 0x4d9   : > { %v3445_v58 = vpop.f32.mrb[83].mxu1 }
 0x4da   : > { %v2593_v7 = vpop.f32.mrb[84].mxu0 }
 0x4db   : > { %v2832_v8 = vsel %vm343_vm1, %v2593_v7, 0.0  ;;  %v3450_v9 = vpop.f32.mrb[85].mxu0 }
 0x4dc   : > { %v2833_v3 = vadd.f32 %v2832_v8, %v2831_v4  ;;  %v2596_v2 = vpop.f32.mrb[86].mxu0 }
 0x4dd   : > { %v3451_v5 = vpop.f32.mrb[87].mxu0 }
 0x4de   : > { %v2639_v12 = vpop.f32.mrb[84].mxu1 }
 0x4df   : > { %v2834_v10 = vsel %vm343_vm1, %v2639_v12, 0.0  ;;  %v3456_v14 = vpop.f32.mrb[85].mxu1 }
 0x4e0   : > { %v2835_v15 = vadd.f32 %v2834_v10, %v2833_v3  ;;  %v2642_v16 = vpop.f32.mrb[86].mxu1 }
 0x4e1   : > { %v3457_v17 = vpop.f32.mrb[87].mxu1 }
 0x4e2   : > { %v2685_v18 = vpop.f32.mrb[88].mxu0 }
 0x4e3   : > { %v2836_v11 = vsel %vm343_vm1, %v2685_v18, 0.0  ;;  %v3462_v19 = vpop.f32.mrb[89].mxu0 }
 0x4e4   : > { %v2837_v13 = vadd.f32 %v2836_v11, %v2835_v15  ;;  %v2688_v20 = vpop.f32.mrb[90].mxu0 }
 0x4e5   : > { %v3463_v21 = vpop.f32.mrb[91].mxu0 }
 0x4e6   : > { %v2731_v22 = vpop.f32.mrb[88].mxu1 }
 0x4e7   : > { %v2838_v23 = vsel %vm343_vm1, %v2731_v22, 0.0  ;;  %v3468_v24 = vpop.f32.mrb[89].mxu1 }
 0x4e8   : > { %v2839_v25 = vadd.f32 %v2838_v23, %v2837_v13  ;;  %v2734_v26 = vpop.f32.mrb[90].mxu1 }
 0x4e9   : > { %v3469_v27 = vpop.f32.mrb[91].mxu1 }
 0x4ea   : > { %v2777_v28 = vpop.f32.mrb[92].mxu0 }
 0x4eb   : > { %v2840_v30 = vsel %vm343_vm1, %v2777_v28, 0.0  ;;  %v3474_v31 = vpop.f32.mrb[93].mxu0 }
 0x4ec   : > { %v2841_v32 = vadd.f32 %v2840_v30, %v2839_v25  ;;  %v2780_v33 = vpop.f32.mrb[94].mxu0 }
 0x4ed   : > { %v3475_v35 = vpop.f32.mrb[95].mxu0 }
 0x4ee   : > { %v2823_v36 = vpop.f32.mrb[92].mxu1 }
 0x4ef   : > { %v2842_v37 = vsel %vm343_vm1, %v2823_v36, 0.0  ;;  %v3480_v38 = vpop.f32.mrb[93].mxu1 }
 0x4f0   : > { %v2843_v39 = vadd.f32 %v2842_v37, %v2841_v32  ;;  %v2826_v40 = vpop.f32.mrb[94].mxu1 }
 0x4f1   : > { %v3481_v42 = vpop.f32.mrb[95].mxu1 }
 0x4f2   : > { %v2844_v43 = vpack.c.bf16 %v2843_v39, %v2843_v39 }
 0x4f4   : > { %2846 = vst.msk [vmem:[%s215_s13] sm:$0xf] %vm2845_vm7, %v2844_v43 }
 0x4f5   : > { %3616 = shalt.err (!%p3613_p3)
}
 0x4f6   : > { %s3617_s6 = scalar_lea.hbm %s4286_s17, 64  ;;  %s3621_s9 = scalar_lea.hbm %s4333_s5, 128 }
 0x4f7   : > { %p3618_p4 = scmp.ne.s32.totalorder %s4286_s17, %s3617_s6  ;;  %p3622_p9 = scmp.lt.u32.totalorder %s4286_s17, %s4333_s5 }
 0x4f8   : > { %p3623_p10 = scmp.lt.u32.totalorder %s3621_s9, %s3617_s6  ;;  %p3625_p12 = scmp.lt.u32.totalorder %s3617_s6, %s4286_s17 }
 0x4f9   : > { %p3619_p7 = pnand %p3618_p4, %p3738_p5 }
 0x4fa   : > { %p3624_p11 = por %p3623_p10, %p3622_p9 }
 0x4fb   : > { %p3620_p8 = pneg %p3619_p7 }
 0x4fc   : > { %p3626_p13 = por %p3625_p12, %p3624_p11 }
 0x4fe   : > { %p3627_p0 = pnand %p3626_p13, %p3620_p8 }
 0x500   : > { %3630 = shalt.err (!%p3627_p0)
}
 0x501   : > { %3482 = dma.vmem_to_hbm [thread:$0]  (%p3738_p5), %s4288_s14, 64, %s4286_s17, %s2848_s23  }
 0x502 PF: > { %p3488_p1 = scmp.ge.s32.totalorder %s3665_s21, 2  ;;  %s2873_s12 = sand.u32 1, %s3653_s18  }
 0x503   : > { %s2874_s13 = scalar_lea.sflag [#allocation3], %s2873_s12 }
 0x504   : > { %p3485_p2 = pnand %p3488_p1, %p3742_p6 }
 0x506   : > { %3648 = dma.done.wait (!%p3485_p2), %s2874_s13, 64  }
 0x507   : > { %3650 = vsyncadd (!%p3485_p2), %s2874_s13, 4294967232  ;;  %p15_p3 = scmp.ge.s32.totalorder %s3725_s24, 4   ;;  %s4338_s18 = smov %s3657_s19 }
 0x508   : > { %s4339_s19 = smov %s3661_s20  ;;  %s4340_s20 = smov %s3736_s27 }
 0x509   : > { %s4341_s21 = smov %s3725_s24  ;;  %17 = sbr.rel (!%p15_p3) target bundleno = 3 (0x3), region = 75 }
 0x510   :  { %2879 = vsyncpa [#allocation3], 1 }
 0x511   :  { %2881 = vsyncpa [#allocation3 + $0x1], 1 }

</bundles_post_ra>
